<compile_context>
chip_gen: v7x
topology: tpu7x:2x2x1
jax: 0.10.0
libtpu: 0.0.40
codegen_flags: <defaults>
</compile_context>

<pallas_src>
import jax
import jax.numpy as jnp
from jax.experimental import pallas as pl
from jax.experimental.pallas import tpu as pltpu  # noqa: F401  (TPU backend)

LANE = 128


# ------------------------------ helpers -----------------------------------

def _ceil_to(v, m):
    return ((v + m - 1) // m) * m


def _pad2d(a, rows, cols):
    a = a.astype(jnp.float32)
    return jnp.pad(a, ((0, rows - a.shape[0]), (0, cols - a.shape[1])))


def _pad_row(v, cols):
    v = v.astype(jnp.float32).reshape(1, -1)
    return jnp.pad(v, ((0, 0), (0, cols - v.shape[1])))


def _spec(shape):
    # full-array block, grid=(1,)
    return pl.BlockSpec(shape, lambda i: (0,) * len(shape))


# ----------------------------- Pallas kernels -----------------------------

def _encoder_kernel(x_ref, xs_ref, we_ref, be_ref, ws_ref, bs_ref, xo_ref, xso_ref):
    xo_ref[...] = (jnp.dot(x_ref[...], we_ref[...], preferred_element_type=jnp.float32)
                   + be_ref[...])
    xso_ref[...] = (jnp.dot(xs_ref[...], ws_ref[...], preferred_element_type=jnp.float32)
                    + bs_ref[...])


def _layer_kernel(x_ref, xs_ref, a_ref, mto_ref, mfrom_ref,
                  wg_ref, bg_ref, wto_ref, bto_ref, wfrom_ref, bfrom_ref,
                  xo_ref, xso_ref):
    x = x_ref[...]            # (N, Hp)  pre-layer node features (also the residual)
    xs = xs_ref[...]          # (S, Sp)  pre-layer fragment features (also the residual)

    # --- GCNConv (+ folded eval BatchNorm) + ReLU ---
    xw = jnp.dot(x, wg_ref[...], preferred_element_type=jnp.float32)
    h = jnp.dot(a_ref[...], xw, preferred_element_type=jnp.float32) + bg_ref[...]
    h = jnp.maximum(h, 0.0)

    # --- to_substructure: SAGE(mean) (+ folded BN) + ReLU + residual ---
    agg = jnp.dot(mto_ref[...], h, preferred_element_type=jnp.float32)        # (S, Hp)
    cat = jnp.concatenate([agg, xs], axis=-1)                                 # (S, Hp+Sp)
    xs_new = jnp.dot(cat, wto_ref[...], preferred_element_type=jnp.float32) + bto_ref[...]
    xs_new = jnp.maximum(xs_new, 0.0) + xs

    # --- from_substructure: SAGE(mean) + residual ---
    agg2 = jnp.dot(mfrom_ref[...], xs_new, preferred_element_type=jnp.float32)  # (N, Sp)
    cat2 = jnp.concatenate([agg2, h], axis=-1)                                  # (N, Sp+Hp)
    x_new = (jnp.dot(cat2, wfrom_ref[...], preferred_element_type=jnp.float32)
             + bfrom_ref[...] + x)

    xo_ref[...] = x_new
    xso_ref[...] = xs_new


def _readout_kernel(x_ref, w1_ref, b1_ref, w2_ref, b2_ref, w3_ref, b3_ref, o_ref):
    y = jnp.dot(x_ref[...], w1_ref[...], preferred_element_type=jnp.float32) + b1_ref[...]
    y = jnp.maximum(y, 0.0)
    y = jnp.dot(y, w2_ref[...], preferred_element_type=jnp.float32) + b2_ref[...]
    y = jnp.maximum(y, 0.0)
    o_ref[...] = jnp.dot(y, w3_ref[...], preferred_element_type=jnp.float32) + b3_ref[...]


# ----------------------------- kernel wrappers -----------------------------

def pallas_encode(xp, xsp, prep):
    N, Ip = xp.shape
    S, Isp = xsp.shape
    Hp = prep["enc_w"].shape[1]
    Sp = prep["enc_sub_w"].shape[1]
    return pl.pallas_call(
        _encoder_kernel,
        out_shape=(jax.ShapeDtypeStruct((N, Hp), jnp.float32),
                   jax.ShapeDtypeStruct((S, Sp), jnp.float32)),
        grid=(1,),
        in_specs=[_spec((N, Ip)), _spec((S, Isp)),
                  _spec((Ip, Hp)), _spec((1, Hp)),
                  _spec((Isp, Sp)), _spec((1, Sp))],
        out_specs=(_spec((N, Hp)), _spec((S, Sp))),
    )(xp, xsp, prep["enc_w"], prep["enc_b"], prep["enc_sub_w"], prep["enc_sub_b"])


def _layer_cost(N, S, Hp, Sp):
    flops = 2 * (N * Hp * Hp + N * N * Hp + S * N * Hp
                 + S * (Hp + Sp) * Sp + N * S * Sp + N * (Sp + Hp) * Hp)
    bytes_accessed = 4 * (2 * N * Hp + 2 * S * Sp + N * N + S * N + N * S
                          + Hp * Hp + Hp + (Hp + Sp) * Sp + Sp + (Sp + Hp) * Hp + Hp)
    return pl.CostEstimate(flops=flops, transcendentals=0, bytes_accessed=bytes_accessed)


def pallas_layer(x, xs, A, Mto, Mfrom, lw):
    N, Hp = x.shape
    S, Sp = xs.shape
    return pl.pallas_call(
        _layer_kernel,
        out_shape=(jax.ShapeDtypeStruct((N, Hp), jnp.float32),
                   jax.ShapeDtypeStruct((S, Sp), jnp.float32)),
        grid=(1,),
        in_specs=[_spec((N, Hp)), _spec((S, Sp)),
                  _spec((N, N)), _spec((S, N)), _spec((N, S)),
                  _spec((Hp, Hp)), _spec((1, Hp)),
                  _spec((Hp + Sp, Sp)), _spec((1, Sp)),
                  _spec((Sp + Hp, Hp)), _spec((1, Hp))],
        out_specs=(_spec((N, Hp)), _spec((S, Sp))),
        cost_estimate=_layer_cost(N, S, Hp, Sp),
    )(x, xs, A, Mto, Mfrom,
      lw["gcn_w"], lw["gcn_b"], lw["to_w"], lw["to_b"], lw["from_w"], lw["from_b"])


def pallas_readout(x, prep):
    N, Hp = x.shape
    (w1, b1), (w2, b2), (w3, b3) = prep["readout"]
    d1, d2, d3 = w1.shape[1], w2.shape[1], w3.shape[1]
    return pl.pallas_call(
        _readout_kernel,
        out_shape=jax.ShapeDtypeStruct((N, d3), jnp.float32),
        grid=(1,),
        in_specs=[_spec((N, Hp)),
                  _spec((Hp, d1)), _spec((1, d1)),
                  _spec((d1, d2)), _spec((1, d2)),
                  _spec((d2, d3)), _spec((1, d3))],
        out_specs=_spec((N, d3)),
    )(x, w1, b1, w2, b2, w3, b3)


# -------------------------- plain-JAX graph glue ---------------------------
# TODO(synk): go sparse (CSR + scalar prefetch) instead of dense operators at large N.

def gcn_norm_dense(edge_index, n):
    """Dense D^{-1/2}(A + I)D^{-1/2}; out[i] = sum over edges j->i of norm * x[j]."""
    src, dst = edge_index[0], edge_index[1]
    loop = jnp.arange(n, dtype=src.dtype)
    src = jnp.concatenate([src, loop])
    dst = jnp.concatenate([dst, loop])
    w = jnp.ones(src.shape[0], jnp.float32)
    deg = jnp.zeros((n,), jnp.float32).at[dst].add(w)
    dinv = jnp.where(deg > 0, 1.0 / jnp.sqrt(deg), 0.0)
    norm = dinv[src] * w * dinv[dst]
    return jnp.zeros((n, n), jnp.float32).at[dst, src].add(norm)


def mean_agg_matrix(src, dst, n_src, n_dst):
    """Row-normalized incidence: out[d] = mean over edges s->d of x[s] (0 if no edges)."""
    counts = jnp.zeros((n_dst, n_src), jnp.float32).at[dst, src].add(1.0)
    deg = counts.sum(axis=1, keepdims=True)
    return counts / jnp.maximum(deg, 1.0)


# ------------------------------ parameters ---------------------------------

def init_params(key, in_ch, in_ch_sub, hidden, hidden_sub, out_ch, num_layers):
    ks = iter(jax.random.split(key, 64))

    def lin(k, fin, fout):
        return 0.1 * jax.random.normal(k, (fin, fout), jnp.float32)  # stored as [in, out]

    p = {
        "enc_w": lin(next(ks), in_ch, hidden),
        "enc_b": 0.1 * jax.random.normal(next(ks), (hidden,), jnp.float32),
        "enc_sub_w": lin(next(ks), in_ch_sub, hidden_sub),
        "enc_sub_b": 0.1 * jax.random.normal(next(ks), (hidden_sub,), jnp.float32),
        "layers": [],
    }
    for _ in range(num_layers):
        lp = {
            # GCNConv(hidden, hidden)
            "gcn_wT": lin(next(ks), hidden, hidden),
            "gcn_b": 0.1 * jax.random.normal(next(ks), (hidden,), jnp.float32),
            # SAGEConv((hidden, hidden_sub) -> hidden_sub)
            "to_wl_T": lin(next(ks), hidden, hidden_sub),
            "to_bl": 0.1 * jax.random.normal(next(ks), (hidden_sub,), jnp.float32),
            "to_wr_T": lin(next(ks), hidden_sub, hidden_sub),
            # SAGEConv((hidden_sub, hidden) -> hidden)
            "from_wl_T": lin(next(ks), hidden_sub, hidden),
            "from_bl": 0.1 * jax.random.normal(next(ks), (hidden,), jnp.float32),
            "from_wr_T": lin(next(ks), hidden, hidden),
            # BatchNorm (eval mode, non-trivial running stats / affine params)
            "bn_g": 1.0 + 0.1 * jax.random.normal(next(ks), (hidden,), jnp.float32),
            "bn_b": 0.1 * jax.random.normal(next(ks), (hidden,), jnp.float32),
            "bn_m": 0.1 * jax.random.normal(next(ks), (hidden,), jnp.float32),
            "bn_v": 1.0 + 0.5 * jax.random.uniform(next(ks), (hidden,), jnp.float32),
            "bns_g": 1.0 + 0.1 * jax.random.normal(next(ks), (hidden_sub,), jnp.float32),
            "bns_b": 0.1 * jax.random.normal(next(ks), (hidden_sub,), jnp.float32),
            "bns_m": 0.1 * jax.random.normal(next(ks), (hidden_sub,), jnp.float32),
            "bns_v": 1.0 + 0.5 * jax.random.uniform(next(ks), (hidden_sub,), jnp.float32),
        }
        p["layers"].append(lp)

    # MLPReadout(hidden, out_ch), L=2: hidden -> hidden//2 -> hidden//4 -> out_ch
    dims = [hidden, hidden // 2, hidden // 4, out_ch]
    p["readout"] = []
    for li in range(3):
        p["readout"].append(
            (lin(next(ks), dims[li], dims[li + 1]),
             0.1 * jax.random.normal(next(ks), (dims[li + 1],), jnp.float32)))
    return p


def prepare_inference_params(params, in_ch, in_ch_sub, hidden, hidden_sub, out_ch, eps=1e-5):
    """Fold eval-mode BN into weights/biases and zero-pad all feature dims to LANE."""
    Hp = _ceil_to(hidden, LANE)
    Sp = _ceil_to(hidden_sub, LANE)
    Ip = _ceil_to(in_ch, LANE)
    Isp = _ceil_to(in_ch_sub, LANE)

    prep = {
        "Ip": Ip, "Isp": Isp, "Hp": Hp, "Sp": Sp, "out_ch": out_ch,
        "enc_w": _pad2d(params["enc_w"], Ip, Hp),
        "enc_b": _pad_row(params["enc_b"], Hp),
        "enc_sub_w": _pad2d(params["enc_sub_w"], Isp, Sp),
        "enc_sub_b": _pad_row(params["enc_sub_b"], Sp),
        "layers": [],
    }

    for lp in params["layers"]:
        # fold node BN into GCNConv
        s = lp["bn_g"] / jnp.sqrt(lp["bn_v"] + eps)
        t = lp["bn_b"] - lp["bn_m"] * s
        gcn_w = lp["gcn_wT"] * s[None, :]
        gcn_b = lp["gcn_b"] * s + t
        # fold substructure BN into to_substructure SAGE
        ss = lp["bns_g"] / jnp.sqrt(lp["bns_v"] + eps)
        ts = lp["bns_b"] - lp["bns_m"] * ss
        to_wl = lp["to_wl_T"] * ss[None, :]
        to_wr = lp["to_wr_T"] * ss[None, :]
        to_b = lp["to_bl"] * ss + ts
        # stacked SAGE weights: [agg | x_dst] @ [[W_l]; [W_r]]
        to_w = jnp.concatenate([_pad2d(to_wl, Hp, Sp), _pad2d(to_wr, Sp, Sp)], axis=0)
        from_w = jnp.concatenate([_pad2d(lp["from_wl_T"], Sp, Hp),
                                  _pad2d(lp["from_wr_T"], Hp, Hp)], axis=0)
        prep["layers"].append({
            "gcn_w": _pad2d(gcn_w, Hp, Hp),
            "gcn_b": _pad_row(gcn_b, Hp),
            "to_w": to_w,
            "to_b": _pad_row(to_b, Sp),
            "from_w": from_w,
            "from_b": _pad_row(lp["from_bl"], Hp),
        })

    dims = [hidden, hidden // 2, hidden // 4, out_ch]
    dims_p = [Hp] + [_ceil_to(d, LANE) for d in dims[1:]]
    prep["readout"] = []
    for li, (w, b) in enumerate(params["readout"]):
        prep["readout"].append((_pad2d(w, dims_p[li], dims_p[li + 1]),
                                _pad_row(b, dims_p[li + 1])))
    return prep


# ------------------------------- forward -----------------------------------

def gcn_substructure_forward(x, x_sub, A_gcn, M_to, M_from, prep):
    N = x.shape[0]
    S = x_sub.shape[0]
    xp = _pad2d(x, N, prep["Ip"])
    xsp = _pad2d(x_sub, S, prep["Isp"])

    x, xs = pallas_encode(xp, xsp, prep)                 # 1 kernel (both encoders)
    for lw in prep["layers"]:
        x, xs = pallas_layer(x, xs, A_gcn, M_to, M_from, lw)   # 1 fused kernel per layer
    y = pallas_readout(x, prep)                          # 1 kernel (3-stage MLP)
    return y[:, :prep["out_ch"]]


# ------------------------- pure-JAX reference (unfused) ---------------------

def reference_forward(x, x_sub, A, Mto, Mfrom, params, eps=1e-5):
    def bn(z, g, b, m, v):
        return (z - m) / jnp.sqrt(v + eps) * g + b

    x = x @ params["enc_w"] + params["enc_b"]
    x_sub = x_sub @ params["enc_sub_w"] + params["enc_sub_b"]
    for lp in params["layers"]:
        x_c, xs_c = x, x_sub
        x = A @ (x @ lp["gcn_wT"]) + lp["gcn_b"]
        x = jax.nn.relu(bn(x, lp["bn_g"], lp["bn_b"], lp["bn_m"], lp["bn_v"]))
        agg = Mto @ x
        xs = agg @ lp["to_wl_T"] + lp["to_bl"] + x_sub @ lp["to_wr_T"]
        xs = jax.nn.relu(bn(xs, lp["bns_g"], lp["bns_b"], lp["bns_m"], lp["bns_v"]))
        x_sub = xs + xs_c
        agg2 = Mfrom @ x_sub
        x = agg2 @ lp["from_wl_T"] + lp["from_bl"] + x @ lp["from_wr_T"]
        x = x + x_c
    (w1, b1), (w2, b2), (w3, b3) = params["readout"]
    y = jax.nn.relu(x @ w1 + b1)
    y = jax.nn.relu(y @ w2 + b2)
    return y @ w3 + b3


# --------------------------------- main -------------------------------------

if __name__ == "__main__":
    key = jax.random.PRNGKey(0)
    k_feat, k_sub, k_e1, k_e2, k_se1, k_se2, k_params = jax.random.split(key, 7)

    # sizes
    N = 64            # nodes
    S = 16            # substructures (fragments)
    IN_CH = 12
    IN_CH_SUB = 8
    HIDDEN = 32
    HIDDEN_SUB = 24
    OUT_CH = 5
    NUM_LAYERS = 2
    E = 200           # node-node edges
    E_SUB = 100       # node-fragment edges

    x = jax.random.normal(k_feat, (N, IN_CH), jnp.float32)
    x_sub = jax.random.normal(k_sub, (S, IN_CH_SUB), jnp.float32)

    edge_src = jax.random.randint(k_e1, (E,), 0, N)
    edge_dst = jax.random.randint(k_e2, (E,), 0, N)
    frag_node = jax.random.randint(k_se1, (E_SUB,), 0, N)   # substructure_edge_index[0] = node
    frag_sub = jax.random.randint(k_se2, (E_SUB,), 0, S)    # substructure_edge_index[1] = fragment

    # dense message-passing operators (plain-JAX glue)
    A_gcn = gcn_norm_dense(jnp.stack([edge_src, edge_dst]), N)      # (N, N)
    M_to = mean_agg_matrix(frag_node, frag_sub, N, S)               # (S, N)  nodes -> fragments
    M_from = mean_agg_matrix(frag_sub, frag_node, S, N)             # (N, S)  fragments -> nodes

    params = init_params(k_params, IN_CH, IN_CH_SUB, HIDDEN, HIDDEN_SUB, OUT_CH, NUM_LAYERS)
    prep = prepare_inference_params(params, IN_CH, IN_CH_SUB, HIDDEN, HIDDEN_SUB, OUT_CH)

    out = gcn_substructure_forward(x, x_sub, A_gcn, M_to, M_from, prep)
    out = jax.block_until_ready(out)

    ref = jax.block_until_ready(reference_forward(x, x_sub, A_gcn, M_to, M_from, params))

    assert out.shape == (N, OUT_CH)
    assert jnp.all(jnp.isfinite(out))
    assert jnp.allclose(out, ref, atol=5e-2, rtol=5e-2)
    print("KERNEL_OK")
</pallas_src>

<mosaic_0001>
module attributes {stable_mosaic.version = 11 : i64} {
  func.func @_encoder_kernel(%arg0: i32, %arg1: memref<64x128xf32, #tpu.memory_space<vmem>>, %arg2: memref<16x128xf32, #tpu.memory_space<vmem>>, %arg3: memref<128x128xf32, #tpu.memory_space<vmem>>, %arg4: memref<1x128xf32, #tpu.memory_space<vmem>>, %arg5: memref<128x128xf32, #tpu.memory_space<vmem>>, %arg6: memref<1x128xf32, #tpu.memory_space<vmem>>, %arg7: memref<64x128xf32, #tpu.memory_space<vmem>>, %arg8: memref<16x128xf32, #tpu.memory_space<vmem>>) attributes {dimension_semantics = [#tpu.dimension_semantics<arbitrary>], iteration_bounds = array<i64: 1>, scalar_prefetch = 0 : i64, scratch_operands = 0 : i64, tpu.core_type = #tpu.core_type<tc>, window_params = [{pipeline_mode = #tpu.pipeline_mode<synchronous>, transform_indices = @transform_0, window_bounds = array<i64: 64, 128>}, {pipeline_mode = #tpu.pipeline_mode<synchronous>, transform_indices = @transform_1, window_bounds = array<i64: 16, 128>}, {pipeline_mode = #tpu.pipeline_mode<synchronous>, transform_indices = @transform_2, window_bounds = array<i64: 128, 128>}, {pipeline_mode = #tpu.pipeline_mode<synchronous>, transform_indices = @transform_3, window_bounds = array<i64: 1, 128>}, {pipeline_mode = #tpu.pipeline_mode<synchronous>, transform_indices = @transform_4, window_bounds = array<i64: 128, 128>}, {pipeline_mode = #tpu.pipeline_mode<synchronous>, transform_indices = @transform_5, window_bounds = array<i64: 1, 128>}, {pipeline_mode = #tpu.pipeline_mode<synchronous>, transform_indices = @transform_6, window_bounds = array<i64: 64, 128>}, {pipeline_mode = #tpu.pipeline_mode<synchronous>, transform_indices = @transform_7, window_bounds = array<i64: 16, 128>}]} {
    %c0 = arith.constant 0 : index
    %c0_0 = arith.constant 0 : index
    %0 = vector.load %arg1[%c0, %c0_0] : memref<64x128xf32, #tpu.memory_space<vmem>>, vector<64x128xf32>
    %c0_1 = arith.constant 0 : index
    %c0_2 = arith.constant 0 : index
    %1 = vector.load %arg3[%c0_1, %c0_2] : memref<128x128xf32, #tpu.memory_space<vmem>>, vector<128x128xf32>
    %cst = arith.constant dense<0.000000e+00> : vector<64x128xf32>
    %2 = tpu.matmul %0, %1, %cst {dimension_numbers = #tpu.dot_dimension_numbers<[1], [0], [0], [1], [0, 0, 1, 1], [], []>} : vector<64x128xf32>, vector<128x128xf32>, vector<64x128xf32> -> vector<64x128xf32>
    %c0_3 = arith.constant 0 : index
    %c0_4 = arith.constant 0 : index
    %3 = vector.load %arg4[%c0_3, %c0_4] : memref<1x128xf32, #tpu.memory_space<vmem>>, vector<1x128xf32>
    %4 = vector.broadcast %3 : vector<1x128xf32> to vector<64x128xf32>
    %5 = arith.addf %2, %4 : vector<64x128xf32>
    %c0_5 = arith.constant 0 : index
    %c0_6 = arith.constant 0 : index
    %6 = vector.load %arg7[%c0_5, %c0_6] : memref<64x128xf32, #tpu.memory_space<vmem>>, vector<64x128xf32>
    tpu.vector_store %arg7[%c0_5, %c0_6], %5 {strides = array<i32>} : memref<64x128xf32, #tpu.memory_space<vmem>>, vector<64x128xf32>,
    %c0_7 = arith.constant 0 : index
    %c0_8 = arith.constant 0 : index
    %7 = vector.load %arg2[%c0_7, %c0_8] : memref<16x128xf32, #tpu.memory_space<vmem>>, vector<16x128xf32>
    %c0_9 = arith.constant 0 : index
    %c0_10 = arith.constant 0 : index
    %8 = vector.load %arg5[%c0_9, %c0_10] : memref<128x128xf32, #tpu.memory_space<vmem>>, vector<128x128xf32>
    %cst_11 = arith.constant dense<0.000000e+00> : vector<16x128xf32>
    %9 = tpu.matmul %7, %8, %cst_11 {dimension_numbers = #tpu.dot_dimension_numbers<[1], [0], [0], [1], [0, 0, 1, 1], [], []>} : vector<16x128xf32>, vector<128x128xf32>, vector<16x128xf32> -> vector<16x128xf32>
    %c0_12 = arith.constant 0 : index
    %c0_13 = arith.constant 0 : index
    %10 = vector.load %arg6[%c0_12, %c0_13] : memref<1x128xf32, #tpu.memory_space<vmem>>, vector<1x128xf32>
    %11 = vector.broadcast %10 : vector<1x128xf32> to vector<16x128xf32>
    %12 = arith.addf %9, %11 : vector<16x128xf32>
    %c0_14 = arith.constant 0 : index
    %c0_15 = arith.constant 0 : index
    %13 = vector.load %arg8[%c0_14, %c0_15] : memref<16x128xf32, #tpu.memory_space<vmem>>, vector<16x128xf32>
    tpu.vector_store %arg8[%c0_14, %c0_15], %12 {strides = array<i32>} : memref<16x128xf32, #tpu.memory_space<vmem>>, vector<16x128xf32>,
    return
  }
  func.func @transform_0(%arg0: i32) -> (i32, i32) {
    %c0_i32 = arith.constant 0 : i32
    %c0_i32_0 = arith.constant 0 : i32
    %c0_i32_1 = arith.constant 0 : i32
    return %c0_i32, %c0_i32_0 : i32, i32
  }
  func.func @transform_1(%arg0: i32) -> (i32, i32) {
    %c0_i32 = arith.constant 0 : i32
    %c0_i32_0 = arith.constant 0 : i32
    %c0_i32_1 = arith.constant 0 : i32
    return %c0_i32, %c0_i32_0 : i32, i32
  }
  func.func @transform_2(%arg0: i32) -> (i32, i32) {
    %c0_i32 = arith.constant 0 : i32
    %c0_i32_0 = arith.constant 0 : i32
    %c0_i32_1 = arith.constant 0 : i32
    return %c0_i32, %c0_i32_0 : i32, i32
  }
  func.func @transform_3(%arg0: i32) -> (i32, i32) {
    %c0_i32 = arith.constant 0 : i32
    %c0_i32_0 = arith.constant 0 : i32
    %c0_i32_1 = arith.constant 0 : i32
    return %c0_i32, %c0_i32_0 : i32, i32
  }
  func.func @transform_4(%arg0: i32) -> (i32, i32) {
    %c0_i32 = arith.constant 0 : i32
    %c0_i32_0 = arith.constant 0 : i32
    %c0_i32_1 = arith.constant 0 : i32
    return %c0_i32, %c0_i32_0 : i32, i32
  }
  func.func @transform_5(%arg0: i32) -> (i32, i32) {
    %c0_i32 = arith.constant 0 : i32
    %c0_i32_0 = arith.constant 0 : i32
    %c0_i32_1 = arith.constant 0 : i32
    return %c0_i32, %c0_i32_0 : i32, i32
  }
  func.func @transform_6(%arg0: i32) -> (i32, i32) {
    %c0_i32 = arith.constant 0 : i32
    %c0_i32_0 = arith.constant 0 : i32
    %c0_i32_1 = arith.constant 0 : i32
    return %c0_i32, %c0_i32_0 : i32, i32
  }
  func.func @transform_7(%arg0: i32) -> (i32, i32) {
    %c0_i32 = arith.constant 0 : i32
    %c0_i32_0 = arith.constant 0 : i32
    %c0_i32_1 = arith.constant 0 : i32
    return %c0_i32, %c0_i32_0 : i32, i32
  }
}

</mosaic_0001>

<bundles_post_ra>
// kernel: tpu_custom_call.1
= control target key start
LH: loop header
LB: loop body
LE: loop exit
PB: predicated region body
PF: predicated region fallthrough
CT: control target
= control target key end

     0   :  { %13 = vsyncpa [#allocation3], 0  ;;  %s858_s0 = inlined_call_operand.hbm [shape: f32[64,128], index: 0, kind: input, shape index: {}]   ;;  %s859_s1 = inlined_call_operand.hbm [shape: f32[16,128], index: 1, kind: input, shape index: {}]   ;;  %s860_s2 = inlined_call_operand.hbm [shape: f32[128,128], index: 2, kind: input, shape index: {}]   ;;  %s861_s3 = inlined_call_operand.vmem [shape: f32[1,128], index: 3, kind: input, shape index: {}]   ;;  %s862_s4 = inlined_call_operand.hbm [shape: f32[128,128], index: 4, kind: input, shape index: {}]   ;;  %s863_s5 = inlined_call_operand.vmem [shape: f32[1,128], index: 5, kind: input, shape index: {}]   ;;  %s864_s6 = inlined_call_operand.hbm [shape: f32[64,128], index: 6, kind: output, shape index: {0}]   ;;  %s865_s7 = inlined_call_operand.hbm [shape: f32[16,128], index: 7, kind: output, shape index: {1}]  }
   0x1   :  { %14 = vsyncpa [#allocation6], 0 }
   0x2   :  { %15 = vsyncpa [#allocation9], 0 }
   0x3   :  { %16 = vsyncpa [#allocation4], 0 }
   0x4   :  { %17 = vsyncpa [#allocation12], 0  ;;  %s700_s24 = smov [#allocation5]   ;;  %s701_s26 = smov [#allocation2]  }
   0x5   :  { %s35_s25 = sshll.u32 %s700_s24, 4  ;;  %s23_s27 = sshll.u32 %s701_s26, 4  ;;  %s36_s25 = int_to_ptr.vmem [resolvable:$true] %s35_s25  ;;  %s748_s27 = int_to_ptr.vmem [resolvable:$true] %s23_s27 }
   0x6   :  { %s558_s30 = scalar_lea.hbm %s859_s1, 256 }
   0x7   :  { %p559_p0 = scmp.ne.s32.totalorder %s859_s1, %s558_s30  ;;  %p562_p1 = scmp.lt.u32.totalorder %s558_s30, %s859_s1 }
   0x9   :  { %p564_p2 = pnand %p562_p1, %p559_p0 }
   0xb   :  { %567 = shalt.err (!%p564_p2)
}
   0xc   :  { %s568_s12 = scalar_lea.vmem %s36_s25, 256  ;;  %p573_p4 = scmp.lt.s32.totalorder %s36_s25, %s36_s25 }
   0xd   :  { %p569_p3 = scmp.ne.s32.totalorder %s36_s25, %s568_s12  ;;  %p574_p5 = scmp.lt.s32.totalorder %s568_s12, %s568_s12 }
   0xf   :  { %p575_p6 = por %p574_p5, %p573_p4 }
  0x11   :  { %p576_p7 = pnand %p575_p6, %p569_p3 }
  0x13   :  { %579 = shalt.err (!%p576_p7)
}
  0x14   :  { %s702_s13 = smov 128   ;;  %s703_s14 = smov 8  }
  0x15   :  { %41 = dma.hbm_to_vmem [thread:$0]  %s859_s1, 256, %s36_s25, [#allocation6], %s702_s13, %s702_s13, %s703_s14  }
  0x16   :  { %s580_s19 = scalar_lea.hbm %s858_s0, 1024 }
  0x17   :  { %p581_p8 = scmp.ne.s32.totalorder %s858_s0, %s580_s19  ;;  %p584_p9 = scmp.lt.u32.totalorder %s580_s19, %s858_s0 }
  0x19   :  { %p586_p10 = pnand %p584_p9, %p581_p8 }
  0x1b   :  { %589 = shalt.err (!%p586_p10)
}
  0x1c   :  { %s590_s24 = scalar_lea.vmem %s748_s27, 1024  ;;  %p595_p12 = scmp.lt.s32.totalorder %s748_s27, %s748_s27 }
  0x1d   :  { %p591_p11 = scmp.ne.s32.totalorder %s748_s27, %s590_s24  ;;  %p596_p13 = scmp.lt.s32.totalorder %s590_s24, %s590_s24 }
  0x1f   :  { %p597_p0 = por %p596_p13, %p595_p12 }
  0x21   :  { %p598_p1 = pnand %p597_p0, %p591_p11 }
  0x23   :  { %601 = shalt.err (!%p598_p1)
}
  0x24   :  { %29 = dma.hbm_to_vmem [thread:$0]  %s858_s0, 1024, %s748_s27, [#allocation3], %s702_s13, %s702_s13, %s703_s14  }
  0x25   :  { %s704_s26 = smov [#allocation7]   ;;  %s705_s29 = smov [#allocation8]  }
  0x26   :  { %s47_s28 = sshll.u32 %s704_s26, 4  ;;  %s61_s30 = sshll.u32 %s705_s29, 4  ;;  %s48_s28 = int_to_ptr.vmem [resolvable:$true] %s47_s28  ;;  %s785_s30 = int_to_ptr.vmem [resolvable:$true] %s61_s30 }
  0x27   :  { %s602_s10 = scalar_lea.hbm %s860_s2, 2048 }
  0x28   :  { %p603_p2 = scmp.ne.s32.totalorder %s860_s2, %s602_s10  ;;  %p606_p3 = scmp.lt.u32.totalorder %s602_s10, %s860_s2 }
  0x2a   :  { %p608_p4 = pnand %p606_p3, %p603_p2 }
  0x2c   :  { %611 = shalt.err (!%p608_p4)
}
  0x2d   :  { %s612_s0 = scalar_lea.vmem %s48_s28, 2048  ;;  %p617_p6 = scmp.lt.s32.totalorder %s48_s28, %s48_s28 }
  0x2e   :  { %p613_p5 = scmp.ne.s32.totalorder %s48_s28, %s612_s0  ;;  %p618_p7 = scmp.lt.s32.totalorder %s612_s0, %s612_s0 }
  0x30   :  { %p619_p8 = por %p618_p7, %p617_p6 }
  0x32   :  { %p620_p9 = pnand %p619_p8, %p613_p5 }
  0x34   :  { %623 = shalt.err (!%p620_p9)
}
  0x35   :  { %53 = dma.hbm_to_vmem [thread:$0]  %s860_s2, 2048, %s48_s28, [#allocation6], %s702_s13, %s702_s13, %s703_s14  }
  0x36   :  { %s624_s20 = scalar_lea.hbm %s862_s4, 2048 }
  0x37   :  { %p625_p10 = scmp.ne.s32.totalorder %s862_s4, %s624_s20  ;;  %p628_p11 = scmp.lt.u32.totalorder %s624_s20, %s862_s4 }
  0x39   :  { %p630_p12 = pnand %p628_p11, %p625_p10 }
  0x3b   :  { %633 = shalt.err (!%p630_p12)
}
  0x3c   :  { %s634_s1 = scalar_lea.vmem %s785_s30, 2048  ;;  %p639_p0 = scmp.lt.s32.totalorder %s785_s30, %s785_s30 }
  0x3d   :  { %p635_p13 = scmp.ne.s32.totalorder %s785_s30, %s634_s1  ;;  %p640_p1 = scmp.lt.s32.totalorder %s634_s1, %s634_s1 }
  0x3f   :  { %p641_p2 = por %p640_p1, %p639_p0 }
  0x41   :  { %p642_p3 = pnand %p641_p2, %p635_p13 }
  0x43   :  { %645 = shalt.err (!%p642_p3)
}
  0x44   :  { %67 = dma.hbm_to_vmem [thread:$0]  %s862_s4, 2048, %s785_s30, [#allocation9], %s702_s13, %s702_s13, %s703_s14  }
  0x45   :  { %690 = dma.done.wait [#allocation3], 1024  }
  0x46   :  { %691 = vsyncadd [#allocation3], 4294966272 }
  0x47   :  { %692 = dma.done.wait [#allocation6], 2304  }
  0x48   :  { %693 = vsyncadd [#allocation6], 4294964992 }
  0x49   :  { %694 = dma.done.wait [#allocation9], 2048  }
  0x4a   :  { %695 = vsyncadd [#allocation9], 4294965248  ;;  %v90_v0 = vld [vmem:[#allocation7] sm:$0xff]  ;;  %v91_v1 = vld [vmem:[#allocation7 + $0x8] sm:$0xff]  ;;  %s706_s30 = smov [#allocation11]  }
  0x4b   :  { %v92_v2 = vld [vmem:[#allocation7 + $0x10] sm:$0xff]  ;;  %v486_v3 = vpack.c.bf16 %v91_v1, %v90_v0  ;;  %v93_v4 = vld [vmem:[#allocation7 + $0x18] sm:$0xff]  ;;  %v94_v5 = vld [vmem:[#allocation7 + $0x20] sm:$0xff]  ;;  %s345_s8 = sshll.u32 %s706_s30, 4  ;;  %s346_s8 = int_to_ptr.vmem [resolvable:$true] %s345_s8 }
  0x4c   :  { %v490_v6 = vpack.c.bf16 %v93_v4, %v92_v2  ;;  %v95_v7 = vld [vmem:[#allocation7 + $0x28] sm:$0xff]  ;;  %v228_v8 = vld [vmem:[#allocation8] sm:$0xff]  ;;  %v230_v11 = vld [vmem:[#allocation8 + $0x10] sm:$0xff]  ;;  %p651_p5 = scmp.lt.s32.totalorder %s346_s8, %s346_s8 }
  0x4d   :  { %v229_v9 = vld [vmem:[#allocation8 + $0x8] sm:$0xff]  ;;  %487 = vmatprep.subr.bf16.mxu0 %v486_v3  ;;  %v231_v12 = vld [vmem:[#allocation8 + $0x18] sm:$0xff]  ;;  %v232_v14 = vld [vmem:[#allocation8 + $0x20] sm:$0xff]  ;;  %v494_v15 = vpack.c.bf16 %v95_v7, %v94_v5 }
  0x4e   :  { %v518_v10 = vpack.c.bf16 %v229_v9, %v228_v8  ;;  %489 = vmatpush3.bf16.msra.mxu0 %v486_v3  ;;  %v522_v13 = vpack.c.bf16 %v231_v12, %v230_v11  ;;  %v233_v16 = vld [vmem:[#allocation8 + $0x28] sm:$0xff]  ;;  %v96_v17 = vld [vmem:[#allocation7 + $0x30] sm:$0xff]  ;;  %v97_v18 = vld [vmem:[#allocation7 + $0x38] sm:$0xff] }
  0x4f   :  { %491 = vmatprep.subr.bf16.mxu0 %v490_v6  ;;  %v526_v19 = vpack.c.bf16 %v233_v16, %v232_v14  ;;  %v234_v20 = vld [vmem:[#allocation8 + $0x30] sm:$0xff]  ;;  %v235_v21 = vld [vmem:[#allocation8 + $0x38] sm:$0xff]  ;;  %v498_v23 = vpack.c.bf16 %v97_v18, %v96_v17  ;;  %v98_v24 = vld [vmem:[#allocation7 + $0x40] sm:$0xff] }
  0x50   :  { %519 = vmatprep.subr.bf16.mxu1 %v518_v10  ;;  %v82_v22 = vld [vmem:[#allocation2] sm:$0xff]  ;;  %v99_v25 = vld [vmem:[#allocation7 + $0x48] sm:$0xff]  ;;  %v530_v26 = vpack.c.bf16 %v235_v21, %v234_v20  ;;  %v236_v27 = vld [vmem:[#allocation8 + $0x40] sm:$0xff] }
  0x51   :  { %521 = vmatpush3.bf16.msra.mxu1 %v518_v10  ;;  %439 = vmatprep.mubr.f32.mxu0 %v82_v22  ;;  %v237_v28 = vld [vmem:[#allocation8 + $0x48] sm:$0xff]  ;;  %v226_v29 = vld [vmem:[#allocation5] sm:$0xff]  ;;  %v502_v30 = vpack.c.bf16 %v99_v25, %v98_v24  ;;  %v101_v32 = vld [vmem:[#allocation7 + $0x58] sm:$0xff] }
  0x52   :  { %523 = vmatprep.subr.bf16.mxu1 %v522_v13  ;;  %493 = vmatpush3.bf16.msra.mxu0 %v490_v6  ;;  %v100_v31 = vld [vmem:[#allocation7 + $0x50] sm:$0xff]  ;;  %v534_v33 = vpack.c.bf16 %v237_v28, %v236_v27  ;;  %v239_v35 = vld [vmem:[#allocation8 + $0x58] sm:$0xff]  ;;  %v102_v37 = vld [vmem:[#allocation7 + $0x60] sm:$0xff] }
  0x53   :  { %495 = vmatprep.subr.bf16.mxu0 %v494_v15  ;;  %483 = vmatprep.mubr.f32.mxu1 %v226_v29  ;;  %v238_v34 = vld [vmem:[#allocation8 + $0x50] sm:$0xff]  ;;  %v506_v36 = vpack.c.bf16 %v101_v32, %v100_v31  ;;  %v103_v38 = vld [vmem:[#allocation7 + $0x68] sm:$0xff]  ;;  %v240_v40 = vld [vmem:[#allocation8 + $0x60] sm:$0xff] }
  0x54   :  { %v538_v39 = vpack.c.bf16 %v239_v35, %v238_v34  ;;  %v241_v41 = vld [vmem:[#allocation8 + $0x68] sm:$0xff]  ;;  %v510_v42 = vpack.c.bf16 %v103_v38, %v102_v37  ;;  %v104_v43 = vld [vmem:[#allocation7 + $0x70] sm:$0xff]  ;;  %v105_v44 = vld [vmem:[#allocation7 + $0x78] sm:$0xff] }
  0x55   :  { %525 = vmatpush3.bf16.msra.mxu1 %v522_v13  ;;  %v542_v45 = vpack.c.bf16 %v241_v41, %v240_v40  ;;  %v242_v46 = vld [vmem:[#allocation8 + $0x70] sm:$0xff]  ;;  %v243_v47 = vld [vmem:[#allocation8 + $0x78] sm:$0xff]  ;;  %v514_v48 = vpack.c.bf16 %v105_v44, %v104_v43  ;;  %v84_v51 = vld [vmem:[#allocation2 + $0x10] sm:$0xff] }
  0x56   :  { %527 = vmatprep.subr.bf16.mxu1 %v526_v19  ;;  %497 = vmatpush3.bf16.msra.mxu0 %v494_v15  ;;  %v546_v49 = vpack.c.bf16 %v243_v47, %v242_v46  ;;  %v83_v50 = vld [vmem:[#allocation2 + $0x8] sm:$0xff]  ;;  %v85_v53 = vld [vmem:[#allocation2 + $0x18] sm:$0xff]  ;;  %v86_v54 = vld [vmem:[#allocation2 + $0x20] sm:$0xff] }
  0x57   :  { %499 = vmatprep.subr.bf16.mxu0 %v498_v23  ;;  %v227_v52 = vld [vmem:[#allocation5 + $0x8] sm:$0xff]  ;;  %v88_v56 = vld [vmem:[#allocation2 + $0x30] sm:$0xff]  ;;  %v89_v57 = vld [vmem:[#allocation2 + $0x38] sm:$0xff] }
  0x58   :  { %v87_v55 = vld [vmem:[#allocation2 + $0x28] sm:$0xff]  ;;  %v363_v58 = vld [vmem:[%s861_s3] ss:$0 sm:$0xff]  ;;  %s646_s3 = scalar_lea.vmem %s346_s8, 256 }
  0x59   :  { %529 = vmatpush3.bf16.msra.mxu1 %v526_v19  ;;  %v364_v60 = vld [vmem:[%s863_s5] ss:$0 sm:$0xff]  ;;  %p647_p4 = scmp.ne.s32.totalorder %s346_s8, %s646_s3  ;;  %p652_p6 = scmp.lt.s32.totalorder %s646_s3, %s646_s3 }
  0x5a   :  { %531 = vmatprep.subr.bf16.mxu1 %v530_v26  ;;  %501 = vmatpush3.bf16.msra.mxu0 %v498_v23 }
  0x5b   :  { %503 = vmatprep.subr.bf16.mxu0 %v502_v30  ;;  %p653_p7 = por %p652_p6, %p651_p5 }
  0x5d   :  { %533 = vmatpush3.bf16.msra.mxu1 %v530_v26  ;;  %p654_p8 = pnand %p653_p7, %p647_p4 }
  0x5e   :  { %535 = vmatprep.subr.bf16.mxu1 %v534_v33  ;;  %505 = vmatpush3.bf16.msra.mxu0 %v502_v30 }
  0x5f   :  { %507 = vmatprep.subr.bf16.mxu0 %v506_v36 }
  0x61   :  { %537 = vmatpush3.bf16.msra.mxu1 %v534_v33 }
  0x62   :  { %539 = vmatprep.subr.bf16.mxu1 %v538_v39  ;;  %509 = vmatpush3.bf16.msra.mxu0 %v506_v36 }
  0x63   :  { %511 = vmatprep.subr.bf16.mxu0 %v510_v42 }
  0x65   :  { %541 = vmatpush3.bf16.msra.mxu1 %v538_v39 }
  0x66   :  { %543 = vmatprep.subr.bf16.mxu1 %v542_v45  ;;  %513 = vmatpush3.bf16.msra.mxu0 %v510_v42 }
  0x67   :  { %515 = vmatprep.subr.bf16.mxu0 %v514_v48 }
  0x69   :  { %545 = vmatpush3.bf16.msra.mxu1 %v542_v45 }
  0x6a   :  { %547 = vmatprep.subr.bf16.mxu1 %v546_v49  ;;  %517 = vmatpush3.bf16.msra.mxu0 %v514_v48 }
  0x6d   :  { %549 = vmatpush3.bf16.msra.mxu1 %v546_v49  ;;  %440 = vmatmul.mubr.f32.vlgmr.msra.gmra.mrb[0].mxu0 %v83_v50 }
  0x6e   :  { %442 = vmatprep.mubr.f32.mxu0 %v84_v51 }
  0x70   :  { %484 = vmatmul.mubr.f32.vlgmr.msra.gmra.mrb[0].mxu1 %v227_v52 }
  0x71   :  { %443 = vmatmul.mubr.f32.gmra.mrb[2].mxu0 %v85_v53 }
  0x72   :  { %445 = vmatprep.mubr.f32.mxu0 %v86_v54 }
  0x75   :  { %446 = vmatmul.mubr.f32.gmra.mrb[4].mxu0 %v87_v55 }
  0x76   :  { %448 = vmatprep.mubr.f32.mxu0 %v88_v56 }
  0x79   :  { %449 = vmatmul.mubr.f32.gmra.mrb[6].mxu0 %v89_v57 }
 0x140   :  { %v441_v59 = vpop.f32.mrb[0].mxu0 }
 0x141   :  { %v185_v61 = vadd.f32 %v441_v59, %v363_v58  ;;  %v179_v62 = vpop.f32.mrb[1].mxu0 }
 0x142   :  { %v180_v63 = vadd.f32 %v363_v58, %v179_v62 }
 0x143   :  { %v485_v0 = vpop.f32.mrb[0].mxu1  ;;  %219 = vst [vmem:[#allocation10 + $0x8] sm:$0xff] %v185_v61 }
 0x144   :  { %v323_v1 = vadd.f32 %v485_v0, %v364_v60  ;;  %v317_v2 = vpop.f32.mrb[1].mxu1  ;;  %218 = vst [vmem:[#allocation10] sm:$0xff] %v180_v63  ;;  %v444_v3 = vpop.f32.mrb[2].mxu0 }
 0x145   :  { %v318_v4 = vadd.f32 %v364_v60, %v317_v2  ;;  %v195_v5 = vadd.f32 %v444_v3, %v363_v58  ;;  %v189_v6 = vpop.f32.mrb[3].mxu0 }
 0x146   :  { %327 = vst [vmem:[#allocation11 + $0x8] sm:$0xff] %v323_v1  ;;  %v190_v7 = vadd.f32 %v363_v58, %v189_v6 }
 0x147   :  { %326 = vst [vmem:[#allocation11] sm:$0xff] %v318_v4  ;;  %221 = vst [vmem:[#allocation10 + $0x18] sm:$0xff] %v195_v5 }
 0x148   :  { %657 = shalt.err (!%p654_p8)
}
 0x149   :  { %s658_s10 = scalar_lea.hbm %s865_s7, 256 }
 0x14a   :  { %p659_p9 = scmp.ne.s32.totalorder %s865_s7, %s658_s10  ;;  %p662_p10 = scmp.lt.u32.totalorder %s658_s10, %s865_s7 }
 0x14c   :  { %p664_p11 = pnand %p662_p10, %p659_p9 }
 0x14e   :  { %667 = shalt.err (!%p664_p11)
}
 0x14f   :  { %351 = dma.vmem_to_hbm [thread:$0]  %s346_s8, 256, %s865_s7, [#allocation12], %s702_s13, %s702_s13, %s703_s14   ;;  %220 = vst [vmem:[#allocation10 + $0x10] sm:$0xff] %v190_v7  ;;  %v447_v8 = vpop.f32.mrb[4].mxu0 }
 0x150   :  { %v205_v9 = vadd.f32 %v447_v8, %v363_v58  ;;  %v199_v10 = vpop.f32.mrb[5].mxu0  ;;  %s707_s17 = smov [#allocation10]  }
 0x151   :  { %v200_v11 = vadd.f32 %v363_v58, %v199_v10  ;;  %s333_s18 = sshll.u32 %s707_s17, 4  ;;  %v450_v12 = vpop.f32.mrb[6].mxu0  ;;  %s334_s18 = int_to_ptr.vmem [resolvable:$true] %s333_s18 }
 0x152   :  { %223 = vst [vmem:[#allocation10 + $0x28] sm:$0xff] %v205_v9  ;;  %v215_v13 = vadd.f32 %v450_v12, %v363_v58  ;;  %v209_v14 = vpop.f32.mrb[7].mxu0  ;;  %s668_s19 = scalar_lea.vmem %s334_s18, 1024  ;;  %p673_p13 = scmp.lt.s32.totalorder %s334_s18, %s334_s18 }
 0x153   :  { %222 = vst [vmem:[#allocation10 + $0x20] sm:$0xff] %v200_v11  ;;  %v210_v15 = vadd.f32 %v363_v58, %v209_v14  ;;  %p669_p12 = scmp.ne.s32.totalorder %s334_s18, %s668_s19  ;;  %p674_p0 = scmp.lt.s32.totalorder %s668_s19, %s668_s19 }
 0x154   :  { %225 = vst [vmem:[#allocation10 + $0x38] sm:$0xff] %v215_v13 }
 0x155   :  { %224 = vst [vmem:[#allocation10 + $0x30] sm:$0xff] %v210_v15  ;;  %p675_p1 = por %p674_p0, %p673_p13 }
 0x157   :  { %p676_p2 = pnand %p675_p1, %p669_p12 }
 0x159   :  { %679 = shalt.err (!%p676_p2)
}
 0x15a   :  { %s680_s21 = scalar_lea.hbm %s864_s6, 1024 }
 0x15b   :  { %p681_p3 = scmp.ne.s32.totalorder %s864_s6, %s680_s21  ;;  %p684_p4 = scmp.lt.u32.totalorder %s680_s21, %s864_s6 }
 0x15d   :  { %p686_p5 = pnand %p684_p4, %p681_p3 }
 0x15f   :  { %689 = shalt.err (!%p686_p5)
}
 0x160   :  { %339 = dma.vmem_to_hbm [thread:$0]  %s334_s18, 1024, %s864_s6, [#allocation4], %s702_s13, %s702_s13, %s703_s14  }
 0x161   :  { %696 = dma.done.wait [#allocation4], 1024  }
 0x162   :  { %697 = vsyncadd [#allocation4], 4294966272 }
 0x163   :  { %698 = dma.done.wait [#allocation12], 256  }
 0x164   :  { %699 = vsyncadd [#allocation12], 4294967040 }
 0x165   :  { %358 = vsyncpa [#allocation3], 1 }
 0x166   :  { %359 = vsyncpa [#allocation6], 1 }
 0x167   :  { %360 = vsyncpa [#allocation9], 1 }
 0x168   :  { %361 = vsyncpa [#allocation4], 1 }
 0x169   :  { %362 = vsyncpa [#allocation12], 1 }

</bundles_post_ra>
